<compile_context>
chip_gen: v6e
topology: v6e:2x2x1
jax: 0.10.0
libtpu: 0.0.40
codegen_flags: <defaults>
</compile_context>

<pallas_src>
import functools
import math

import jax
import jax.numpy as jnp
from jax import lax
from jax.experimental import pallas as pl
from jax.experimental.pallas import tpu as pltpu


def _vmem_limit_bytes():
    """Generation-aware scoped-VMEM limit: ~100 MiB on 128-MiB parts
    (v5e/v6e), capacity-minus-headroom (~56 MiB) on 64-MiB parts (v7x)."""
    try:
        cap = pltpu.get_tpu_info().vmem_capacity_bytes
        return int(min(cap - (8 << 20), 100 << 20))
    except Exception:
        return None  # fall back to the compiler default


# ============================================================================
# Pass 1: fused LayerNorm + QKV projection, head-major outputs.
# ============================================================================
def ln_qkv_kernel(x_ref, gamma_ref, beta_ref, wqkv_ref, bqkv_ref,
                  q_ref, kv_ref, *, num_heads, head_dim, eps):
    hidden = num_heads * head_dim
    x = x_ref[...]                                            # (TS, H) f32

    # ---- LayerNorm over hidden dim (f32) ----
    mu = jnp.mean(x, axis=-1, keepdims=True)
    xc = x - mu
    var = jnp.mean(xc * xc, axis=-1, keepdims=True)
    xn = xc * lax.rsqrt(var + eps) * gamma_ref[0] + beta_ref[0]

    # ---- fused QKV projection (softmax scale pre-folded into q columns) ----
    qkv = jnp.dot(xn.astype(jnp.bfloat16), wqkv_ref[...],
                  preferred_element_type=jnp.float32) + bqkv_ref[0]
    qkv = qkv.astype(jnp.bfloat16)                            # (TS, 3H)

    # Scatter head-concat matmul columns into the head-major outputs.  Static
    # lane slices; pass 1 is matmul-bound so this relayout is negligible.
    for h in range(num_heads):
        lo = h * head_dim
        hi = lo + head_dim
        q_ref[h] = qkv[:, lo:hi]
        kv_ref[0, h] = qkv[:, hidden + lo:hidden + hi]
        kv_ref[1, h] = qkv[:, 2 * hidden + lo:2 * hidden + hi]


# ============================================================================
# Pass 2: flash attention (online softmax over key blocks) + fused grouped
#         output projection + bias + residual for one (TQ, H) query block.
# ============================================================================
def flash_group_kernel(x_ref, q_ref, kv_ref, wo_ref, bo_ref, o_ref,
                       m_sc, l_sc, acc_sc, *, num_heads, head_dim,
                       head_unroll):
    ki = pl.program_id(2)

    @pl.when(ki == 0)
    def _init():
        m_sc[...] = jnp.full(m_sc.shape, -jnp.inf, m_sc.dtype)
        l_sc[...] = jnp.zeros(l_sc.shape, l_sc.dtype)
        acc_sc[...] = jnp.zeros(acc_sc.shape, acc_sc.dtype)

    # Online-softmax update, one head at a time.  fori_loop bounds live ranges
    # (only one (TQ, TK) f32 score tile alive at a time); all head indexing is
    # on leading (untiled) axes -> no lane relayout, no masked stores.
    def head_body(h, carry):
        qh = q_ref[h]                      # (TQ, d) bf16, scale pre-folded
        kh = kv_ref[0, h]                  # (TK, d) bf16
        vh = kv_ref[1, h]                  # (TK, d) bf16

        s = lax.dot_general(qh, kh, (((1,), (1,)), ((), ())),
                            preferred_element_type=jnp.float32)   # (TQ, TK)

        m_prev = m_sc[h]                                          # (TQ, 1)
        m_new = jnp.maximum(m_prev, jnp.max(s, axis=-1, keepdims=True))
        alpha = jnp.exp(m_prev - m_new)
        p = jnp.exp(s - m_new)                                    # (TQ, TK)
        # TODO(synk): on v6e/v7x a bf16 exp path (~2x EUP throughput) is
        # possible here; kept f32 for v5e compatibility / accuracy.

        l_sc[h] = alpha * l_sc[h] + jnp.sum(p, axis=-1, keepdims=True)
        acc_sc[h] = alpha * acc_sc[h] + jnp.dot(
            p.astype(jnp.bfloat16), vh, preferred_element_type=jnp.float32)
        m_sc[h] = m_new
        return carry

    lax.fori_loop(0, num_heads, head_body, 0, unroll=head_unroll)

    @pl.when(ki == pl.num_programs(2) - 1)
    def _finalize():
        # Per-head softmax normalization + grouped (block-diagonal) output
        # projection + bias + residual.  Static Python loop (tiny (TQ, d)
        # live ranges, static lane offsets); runs once per query block only.
        for h in range(num_heads):
            lo = h * head_dim
            hi = lo + head_dim
            inv_l = pl.reciprocal(l_sc[h], approx=True)           # EUP slot
            out_h = (acc_sc[h] * inv_l).astype(jnp.bfloat16)
            proj = jnp.dot(out_h, wo_ref[h],
                           preferred_element_type=jnp.float32)
            o_ref[:, lo:hi] = (proj + bo_ref[0, lo:hi]
                               + x_ref[:, lo:hi]).astype(o_ref.dtype)


# ============================================================================
# Wrapper: one LIV layer = 2 pallas_calls.
# ============================================================================
def liv_layer(x, params, *, num_heads, ts=512, tq=512, tk=256):
    B, S, H = x.shape
    assert H % num_heads == 0
    head_dim = H // num_heads
    eps = 1e-5

    TS = min(ts, S)
    TQ = min(tq, S)
    TK = min(tk, S)
    assert S % TS == 0 and S % TQ == 0 and S % TK == 0, "S must tile evenly"

    head_unroll = num_heads <= 4          # unroll only when spill-safe
    vmem_limit = _vmem_limit_bytes()
    sb = pl.Buffered(1)                   # single-buffer constant-index blocks

    wqkv = params["wqkv"]     # (H, 3H)  bf16, q-columns pre-scaled
    bqkv = params["bqkv"]     # (1, 3H)  f32, q-slice pre-scaled
    wo = params["wo_g"]       # (num_heads, d, d)  bf16
    bo = params["bo"]         # (1, H)   f32

    # ---- pass 1: LayerNorm + fused QKV projection (head-major outputs) ----
    # TODO(synk): for very large H (>= ~2048) on v7x, additionally column-tile
    # the (H, 3H) weight with an extra grid axis to keep the resident slab
    # within the 64 MiB VMEM budget.
    q_hm, kv_hm = pl.pallas_call(
        functools.partial(ln_qkv_kernel, num_heads=num_heads,
                          head_dim=head_dim, eps=eps),
        out_shape=(
            jax.ShapeDtypeStruct((B, num_heads, S, head_dim), jnp.bfloat16),
            jax.ShapeDtypeStruct((B, 2, num_heads, S, head_dim), jnp.bfloat16),
        ),
        grid=(B, S // TS),
        in_specs=[
            pl.BlockSpec((None, TS, H), lambda b, si: (b, si, 0)),
            pl.BlockSpec((1, H), lambda b, si: (0, 0), pipeline_mode=sb),
            pl.BlockSpec((1, H), lambda b, si: (0, 0), pipeline_mode=sb),
            pl.BlockSpec((H, 3 * H), lambda b, si: (0, 0), pipeline_mode=sb),
            pl.BlockSpec((1, 3 * H), lambda b, si: (0, 0), pipeline_mode=sb),
        ],
        out_specs=(
            pl.BlockSpec((None, num_heads, TS, head_dim),
                         lambda b, si: (b, 0, si, 0)),
            pl.BlockSpec((None, 2, num_heads, TS, head_dim),
                         lambda b, si: (b, 0, 0, si, 0)),
        ),
        compiler_params=pltpu.CompilerParams(
            dimension_semantics=("parallel", "parallel"),
            vmem_limit_bytes=vmem_limit),
        cost_estimate=pl.CostEstimate(
            flops=int(2 * B * S * H * 3 * H),
            transcendentals=int(B * S),
            bytes_accessed=int(4 * B * S * H + 2 * 3 * B * S * H
                               + 2 * H * 3 * H + 4 * 3 * H)),
    )(x, params["gamma"], params["beta"], wqkv, bqkv)

    # ---- pass 2: flash attention + grouped projection + bias + residual ----
    n_q = S // TQ
    out = pl.pallas_call(
        functools.partial(flash_group_kernel, num_heads=num_heads,
                          head_dim=head_dim, head_unroll=head_unroll),
        out_shape=jax.ShapeDtypeStruct((B, S, H), x.dtype),
        grid=(B, n_q, S // TK),
        in_specs=[
            # residual x: constant along ki -> single-buffered
            pl.BlockSpec((None, TQ, H), lambda b, qi, ki: (b, qi, 0),
                         pipeline_mode=sb),
            # q (head-major): constant along ki -> single-buffered
            pl.BlockSpec((None, num_heads, TQ, head_dim),
                         lambda b, qi, ki: (b, 0, qi, 0), pipeline_mode=sb),
            # k & v fetched as ONE streaming block along ki
            pl.BlockSpec((None, 2, num_heads, TK, head_dim),
                         lambda b, qi, ki: (b, 0, 0, ki, 0)),
            # grouped output-projection weights + bias: constant
            pl.BlockSpec((num_heads, head_dim, head_dim),
                         lambda b, qi, ki: (0, 0, 0), pipeline_mode=sb),
            pl.BlockSpec((1, H), lambda b, qi, ki: (0, 0), pipeline_mode=sb),
        ],
        out_specs=pl.BlockSpec((None, TQ, H), lambda b, qi, ki: (b, qi, 0)),
        scratch_shapes=[
            pltpu.VMEM((num_heads, TQ, 1), jnp.float32),         # running max
            pltpu.VMEM((num_heads, TQ, 1), jnp.float32),         # running sum
            pltpu.VMEM((num_heads, TQ, head_dim), jnp.float32),  # head-major acc
        ],
        compiler_params=pltpu.CompilerParams(
            dimension_semantics=("parallel", "parallel", "arbitrary"),
            vmem_limit_bytes=vmem_limit),
        cost_estimate=pl.CostEstimate(
            flops=int(4 * B * S * S * H + 2 * B * S * H * head_dim),
            transcendentals=int(B * num_heads * S * S),
            bytes_accessed=int(2 * B * S * H            # q (bf16), once per qi
                               + n_q * 4 * B * S * H    # k+v re-read per qi
                               + 4 * B * S * H          # residual x (f32)
                               + 4 * B * S * H          # output (f32)
                               + 2 * num_heads * head_dim * head_dim + 4 * H)),
    )(x, q_hm, kv_hm, wo, bo)
    return out


def star_model(x, layer_params, *, num_heads):
    # STARModel.forward: x = LIV(LN(x)) + x per layer (fused inside the kernels).
    for p in layer_params:
        x = liv_layer(x, p, num_heads=num_heads)
    return x


# ============================================================================
# Deterministic synthetic params + pure-JAX f32 reference for verification.
# ============================================================================
def init_layer_params(key, hidden, num_heads):
    head_dim = hidden // num_heads
    ks = jax.random.split(key, 8)
    std = 0.05

    def mat(k):
        return (std * jax.random.normal(k, (hidden, hidden))).astype(jnp.float32)

    def vec(k):
        return (std * jax.random.normal(k, (1, hidden))).astype(jnp.float32)

    # grouped 1x1 conv == per-head (d_in, d_out) matrices (stored input-major)
    wo_g = (std * jax.random.normal(ks[6], (num_heads, head_dim, head_dim))
            ).astype(jnp.float32)

    return {
        "gamma": jnp.ones((1, hidden), jnp.float32),
        "beta": jnp.zeros((1, hidden), jnp.float32),
        "wq": mat(ks[0]), "bq": vec(ks[1]),
        "wk": mat(ks[2]), "bk": vec(ks[3]),
        "wv": mat(ks[4]), "bv": vec(ks[5]),
        "wo_g": wo_g, "bo": vec(ks[7]),
    }


def prep_kernel_params(p, num_heads):
    """Pack params into the kernel layout: fused bf16 QKV weight with the
    softmax scale folded into the q columns/bias, grouped bf16 wo."""
    hidden = p["wq"].shape[0]
    head_dim = hidden // num_heads
    scale = 1.0 / math.sqrt(head_dim)
    wqkv = jnp.concatenate([p["wq"] * scale, p["wk"], p["wv"]],
                           axis=1).astype(jnp.bfloat16)
    bqkv = jnp.concatenate([p["bq"] * scale, p["bk"], p["bv"]], axis=1)
    return {
        "gamma": p["gamma"],
        "beta": p["beta"],
        "wqkv": wqkv,
        "bqkv": bqkv,
        "wo_g": p["wo_g"].astype(jnp.bfloat16),
        "bo": p["bo"],
    }


def star_reference(x, layer_params, *, num_heads):
    """Pure-JAX f32 reference matching the PyTorch forward (eval, mask=None)."""
    B, S, H = x.shape
    d = H // num_heads
    scale = 1.0 / math.sqrt(d)
    for p in layer_params:
        residual = x
        mu = jnp.mean(x, axis=-1, keepdims=True)
        var = jnp.mean((x - mu) ** 2, axis=-1, keepdims=True)
        xn = (x - mu) / jnp.sqrt(var + 1e-5) * p["gamma"][0] + p["beta"][0]
        q = xn @ p["wq"] + p["bq"][0]
        k = xn @ p["wk"] + p["bk"][0]
        v = xn @ p["wv"] + p["bv"][0]
        qh = q.reshape(B, S, num_heads, d).transpose(0, 2, 1, 3)
        kh = k.reshape(B, S, num_heads, d).transpose(0, 2, 1, 3)
        vh = v.reshape(B, S, num_heads, d).transpose(0, 2, 1, 3)
        attn = jax.nn.softmax(jnp.einsum("bhsd,bhtd->bhst", qh, kh) * scale, -1)
        out = jnp.einsum("bhst,bhtd->bhsd", attn, vh)          # (B, nh, S, d)
        out = jnp.einsum("bhsd,hde->bhse", out, p["wo_g"])      # grouped 1x1 conv
        out = out.transpose(0, 2, 1, 3).reshape(B, S, H) + p["bo"][0]
        x = out + residual
    return x


if __name__ == "__main__":
    B, S, H = 2, 8, 32
    NUM_HEADS = 4
    NUM_LAYERS = 2

    root = jax.random.PRNGKey(0)
    kx, *layer_keys = jax.random.split(root, NUM_LAYERS + 1)
    x = jax.random.normal(kx, (B, S, H), dtype=jnp.float32)
    layer_params = [init_layer_params(k, H, NUM_HEADS) for k in layer_keys]
    kernel_params = [prep_kernel_params(p, NUM_HEADS) for p in layer_params]

    out = star_model(x, kernel_params, num_heads=NUM_HEADS)
    out = jax.block_until_ready(out)

    ref = star_reference(x, layer_params, num_heads=NUM_HEADS)
    assert out.shape == (B, S, H)
    # bf16 MXU operands + approx softmax reciprocal => looser tolerance than
    # a pure-f32 comparison.
    assert jnp.allclose(out, ref, atol=2e-2, rtol=2e-2), \
        "mismatch vs pure-JAX reference"

    # TODO(synk): optional attention mask path and dropout (train mode) are not
    # implemented (eval semantics, mask=None only).
    print("KERNEL_OK")
</pallas_src>

<mosaic_0001>
module attributes {stable_mosaic.version = 11 : i64} {
  func.func @ln_qkv_kernel(%arg0: i32, %arg1: i32, %arg2: memref<1x8x32xf32, #tpu.memory_space<vmem>>, %arg3: memref<1x32xf32, #tpu.memory_space<vmem>>, %arg4: memref<1x32xf32, #tpu.memory_space<vmem>>, %arg5: memref<32x96xbf16, #tpu.memory_space<vmem>>, %arg6: memref<1x96xf32, #tpu.memory_space<vmem>>, %arg7: memref<1x4x8x8xbf16, #tpu.memory_space<vmem>>, %arg8: memref<1x2x4x8x8xbf16, #tpu.memory_space<vmem>>) attributes {dimension_semantics = [#tpu.dimension_semantics<parallel>, #tpu.dimension_semantics<parallel>], iteration_bounds = array<i64: 2, 1>, scalar_prefetch = 0 : i64, scratch_operands = 0 : i64, tpu.core_type = #tpu.core_type<tc>, window_params = [{transform_indices = @transform_0, window_bounds = array<i64: 1, 8, 32>}, {pipeline_mode = #tpu.pipeline_mode<synchronous>, transform_indices = @transform_1, window_bounds = array<i64: 1, 32>}, {pipeline_mode = #tpu.pipeline_mode<synchronous>, transform_indices = @transform_2, window_bounds = array<i64: 1, 32>}, {pipeline_mode = #tpu.pipeline_mode<synchronous>, transform_indices = @transform_3, window_bounds = array<i64: 32, 96>}, {pipeline_mode = #tpu.pipeline_mode<synchronous>, transform_indices = @transform_4, window_bounds = array<i64: 1, 96>}, {transform_indices = @transform_5, window_bounds = array<i64: 1, 4, 8, 8>}, {transform_indices = @transform_6, window_bounds = array<i64: 1, 2, 4, 8, 8>}]} {
    %c0 = arith.constant 0 : index
    %c0_0 = arith.constant 0 : index
    %c0_1 = arith.constant 0 : index
    %0 = vector.load %arg2[%c0, %c0_0, %c0_1] : memref<1x8x32xf32, #tpu.memory_space<vmem>>, vector<1x8x32xf32>
    %1 = vector.shape_cast %0 : vector<1x8x32xf32> to vector<8x32xf32>
    %cst = arith.constant dense<0.000000e+00> : vector<8xf32>
    %2 = vector.multi_reduction <add>, %1, %cst [1] : vector<8x32xf32> to vector<8xf32>
    %3 = vector.shape_cast %2 : vector<8xf32> to vector<8x1xf32>
    %cst_2 = arith.constant 3.200000e+01 : f32
    %4 = vector.broadcast %cst_2 : f32 to vector<8x1xf32>
    %5 = arith.divf %3, %4 : vector<8x1xf32>
    %6 = vector.broadcast %5 : vector<8x1xf32> to vector<8x32xf32>
    %7 = arith.subf %1, %6 : vector<8x32xf32>
    %8 = arith.mulf %7, %7 : vector<8x32xf32>
    %cst_3 = arith.constant dense<0.000000e+00> : vector<8xf32>
    %9 = vector.multi_reduction <add>, %8, %cst_3 [1] : vector<8x32xf32> to vector<8xf32>
    %10 = vector.shape_cast %9 : vector<8xf32> to vector<8x1xf32>
    %cst_4 = arith.constant 3.200000e+01 : f32
    %11 = vector.broadcast %cst_4 : f32 to vector<8x1xf32>
    %12 = arith.divf %10, %11 : vector<8x1xf32>
    %cst_5 = arith.constant 9.99999974E-6 : f32
    %13 = vector.broadcast %cst_5 : f32 to vector<8x1xf32>
    %14 = arith.addf %12, %13 : vector<8x1xf32>
    %15 = math.rsqrt %14 : vector<8x1xf32>
    %16 = vector.broadcast %15 : vector<8x1xf32> to vector<8x32xf32>
    %17 = arith.mulf %7, %16 : vector<8x32xf32>
    %c0_6 = arith.constant 0 : index
    %c0_7 = arith.constant 0 : index
    %18 = vector.load %arg3[%c0_6, %c0_7] : memref<1x32xf32, #tpu.memory_space<vmem>>, vector<1x32xf32>
    %19 = vector.shape_cast %18 : vector<1x32xf32> to vector<32xf32>
    %20 = vector.shape_cast %19 : vector<32xf32> to vector<1x32xf32>
    %21 = vector.broadcast %20 : vector<1x32xf32> to vector<8x32xf32>
    %22 = arith.mulf %17, %21 : vector<8x32xf32>
    %c0_8 = arith.constant 0 : index
    %c0_9 = arith.constant 0 : index
    %23 = vector.load %arg4[%c0_8, %c0_9] : memref<1x32xf32, #tpu.memory_space<vmem>>, vector<1x32xf32>
    %24 = vector.shape_cast %23 : vector<1x32xf32> to vector<32xf32>
    %25 = vector.shape_cast %24 : vector<32xf32> to vector<1x32xf32>
    %26 = vector.broadcast %25 : vector<1x32xf32> to vector<8x32xf32>
    %27 = arith.addf %22, %26 : vector<8x32xf32>
    %28 = arith.truncf %27 : vector<8x32xf32> to vector<8x32xbf16>
    %c0_10 = arith.constant 0 : index
    %c0_11 = arith.constant 0 : index
    %29 = vector.load %arg5[%c0_10, %c0_11] : memref<32x96xbf16, #tpu.memory_space<vmem>>, vector<32x96xbf16>
    %cst_12 = arith.constant dense<0.000000e+00> : vector<8x96xf32>
    %30 = tpu.matmul %28, %29, %cst_12 {dimension_numbers = #tpu.dot_dimension_numbers<[1], [0], [0], [1], [0, 0, 1, 1], [], []>} : vector<8x32xbf16>, vector<32x96xbf16>, vector<8x96xf32> -> vector<8x96xf32>
    %c0_13 = arith.constant 0 : index
    %c0_14 = arith.constant 0 : index
    %31 = vector.load %arg6[%c0_13, %c0_14] : memref<1x96xf32, #tpu.memory_space<vmem>>, vector<1x96xf32>
    %32 = vector.shape_cast %31 : vector<1x96xf32> to vector<96xf32>
    %33 = vector.shape_cast %32 : vector<96xf32> to vector<1x96xf32>
    %34 = vector.broadcast %33 : vector<1x96xf32> to vector<8x96xf32>
    %35 = arith.addf %30, %34 : vector<8x96xf32>
    %36 = arith.truncf %35 : vector<8x96xf32> to vector<8x96xbf16>
    %37 = vector.extract_strided_slice %36 {offsets = [0, 0], sizes = [8, 8], strides = [1, 1]} : vector<8x96xbf16> to vector<8x8xbf16>
    %c0_15 = arith.constant 0 : index
    %c0_16 = arith.constant 0 : index
    %c0_17 = arith.constant 0 : index
    %c0_18 = arith.constant 0 : index
    %38 = vector.load %arg7[%c0_15, %c0_16, %c0_17, %c0_18] : memref<1x4x8x8xbf16, #tpu.memory_space<vmem>>, vector<1x1x8x8xbf16>
    %39 = vector.shape_cast %38 : vector<1x1x8x8xbf16> to vector<8x8xbf16>
    %40 = vector.shape_cast %37 : vector<8x8xbf16> to vector<1x1x8x8xbf16>
    tpu.vector_store %arg7[%c0_15, %c0_16, %c0_17, %c0_18], %40 {strides = array<i32>} : memref<1x4x8x8xbf16, #tpu.memory_space<vmem>>, vector<1x1x8x8xbf16>,
    %41 = vector.extract_strided_slice %36 {offsets = [0, 32], sizes = [8, 8], strides = [1, 1]} : vector<8x96xbf16> to vector<8x8xbf16>
    %c0_19 = arith.constant 0 : index
    %c0_20 = arith.constant 0 : index
    %c0_21 = arith.constant 0 : index
    %c0_22 = arith.constant 0 : index
    %c0_23 = arith.constant 0 : index
    %42 = vector.load %arg8[%c0_19, %c0_20, %c0_21, %c0_22, %c0_23] : memref<1x2x4x8x8xbf16, #tpu.memory_space<vmem>>, vector<1x1x1x8x8xbf16>
    %43 = vector.shape_cast %42 : vector<1x1x1x8x8xbf16> to vector<8x8xbf16>
    %44 = vector.shape_cast %41 : vector<8x8xbf16> to vector<1x1x1x8x8xbf16>
    tpu.vector_store %arg8[%c0_19, %c0_20, %c0_21, %c0_22, %c0_23], %44 {strides = array<i32>} : memref<1x2x4x8x8xbf16, #tpu.memory_space<vmem>>, vector<1x1x1x8x8xbf16>,
    %45 = vector.extract_strided_slice %36 {offsets = [0, 64], sizes = [8, 8], strides = [1, 1]} : vector<8x96xbf16> to vector<8x8xbf16>
    %c0_24 = arith.constant 0 : index
    %c1 = arith.constant 1 : index
    %c0_25 = arith.constant 0 : index
    %c0_26 = arith.constant 0 : index
    %c0_27 = arith.constant 0 : index
    %46 = vector.load %arg8[%c0_24, %c1, %c0_25, %c0_26, %c0_27] : memref<1x2x4x8x8xbf16, #tpu.memory_space<vmem>>, vector<1x1x1x8x8xbf16>
    %47 = vector.shape_cast %46 : vector<1x1x1x8x8xbf16> to vector<8x8xbf16>
    %48 = vector.shape_cast %45 : vector<8x8xbf16> to vector<1x1x1x8x8xbf16>
    tpu.vector_store %arg8[%c0_24, %c1, %c0_25, %c0_26, %c0_27], %48 {strides = array<i32>} : memref<1x2x4x8x8xbf16, #tpu.memory_space<vmem>>, vector<1x1x1x8x8xbf16>,
    %49 = vector.extract_strided_slice %36 {offsets = [0, 8], sizes = [8, 8], strides = [1, 1]} : vector<8x96xbf16> to vector<8x8xbf16>
    %c0_28 = arith.constant 0 : index
    %c1_29 = arith.constant 1 : index
    %c0_30 = arith.constant 0 : index
    %c0_31 = arith.constant 0 : index
    %50 = vector.load %arg7[%c0_28, %c1_29, %c0_30, %c0_31] : memref<1x4x8x8xbf16, #tpu.memory_space<vmem>>, vector<1x1x8x8xbf16>
    %51 = vector.shape_cast %50 : vector<1x1x8x8xbf16> to vector<8x8xbf16>
    %52 = vector.shape_cast %49 : vector<8x8xbf16> to vector<1x1x8x8xbf16>
    tpu.vector_store %arg7[%c0_28, %c1_29, %c0_30, %c0_31], %52 {strides = array<i32>} : memref<1x4x8x8xbf16, #tpu.memory_space<vmem>>, vector<1x1x8x8xbf16>,
    %53 = vector.extract_strided_slice %36 {offsets = [0, 40], sizes = [8, 8], strides = [1, 1]} : vector<8x96xbf16> to vector<8x8xbf16>
    %c0_32 = arith.constant 0 : index
    %c0_33 = arith.constant 0 : index
    %c1_34 = arith.constant 1 : index
    %c0_35 = arith.constant 0 : index
    %c0_36 = arith.constant 0 : index
    %54 = vector.load %arg8[%c0_32, %c0_33, %c1_34, %c0_35, %c0_36] : memref<1x2x4x8x8xbf16, #tpu.memory_space<vmem>>, vector<1x1x1x8x8xbf16>
    %55 = vector.shape_cast %54 : vector<1x1x1x8x8xbf16> to vector<8x8xbf16>
    %56 = vector.shape_cast %53 : vector<8x8xbf16> to vector<1x1x1x8x8xbf16>
    tpu.vector_store %arg8[%c0_32, %c0_33, %c1_34, %c0_35, %c0_36], %56 {strides = array<i32>} : memref<1x2x4x8x8xbf16, #tpu.memory_space<vmem>>, vector<1x1x1x8x8xbf16>,
    %57 = vector.extract_strided_slice %36 {offsets = [0, 72], sizes = [8, 8], strides = [1, 1]} : vector<8x96xbf16> to vector<8x8xbf16>
    %c0_37 = arith.constant 0 : index
    %c1_38 = arith.constant 1 : index
    %c1_39 = arith.constant 1 : index
    %c0_40 = arith.constant 0 : index
    %c0_41 = arith.constant 0 : index
    %58 = vector.load %arg8[%c0_37, %c1_38, %c1_39, %c0_40, %c0_41] : memref<1x2x4x8x8xbf16, #tpu.memory_space<vmem>>, vector<1x1x1x8x8xbf16>
    %59 = vector.shape_cast %58 : vector<1x1x1x8x8xbf16> to vector<8x8xbf16>
    %60 = vector.shape_cast %57 : vector<8x8xbf16> to vector<1x1x1x8x8xbf16>
    tpu.vector_store %arg8[%c0_37, %c1_38, %c1_39, %c0_40, %c0_41], %60 {strides = array<i32>} : memref<1x2x4x8x8xbf16, #tpu.memory_space<vmem>>, vector<1x1x1x8x8xbf16>,
    %61 = vector.extract_strided_slice %36 {offsets = [0, 16], sizes = [8, 8], strides = [1, 1]} : vector<8x96xbf16> to vector<8x8xbf16>
    %c0_42 = arith.constant 0 : index
    %c2 = arith.constant 2 : index
    %c0_43 = arith.constant 0 : index
    %c0_44 = arith.constant 0 : index
    %62 = vector.load %arg7[%c0_42, %c2, %c0_43, %c0_44] : memref<1x4x8x8xbf16, #tpu.memory_space<vmem>>, vector<1x1x8x8xbf16>
    %63 = vector.shape_cast %62 : vector<1x1x8x8xbf16> to vector<8x8xbf16>
    %64 = vector.shape_cast %61 : vector<8x8xbf16> to vector<1x1x8x8xbf16>
    tpu.vector_store %arg7[%c0_42, %c2, %c0_43, %c0_44], %64 {strides = array<i32>} : memref<1x4x8x8xbf16, #tpu.memory_space<vmem>>, vector<1x1x8x8xbf16>,
    %65 = vector.extract_strided_slice %36 {offsets = [0, 48], sizes = [8, 8], strides = [1, 1]} : vector<8x96xbf16> to vector<8x8xbf16>
    %c0_45 = arith.constant 0 : index
    %c0_46 = arith.constant 0 : index
    %c2_47 = arith.constant 2 : index
    %c0_48 = arith.constant 0 : index
    %c0_49 = arith.constant 0 : index
    %66 = vector.load %arg8[%c0_45, %c0_46, %c2_47, %c0_48, %c0_49] : memref<1x2x4x8x8xbf16, #tpu.memory_space<vmem>>, vector<1x1x1x8x8xbf16>
    %67 = vector.shape_cast %66 : vector<1x1x1x8x8xbf16> to vector<8x8xbf16>
    %68 = vector.shape_cast %65 : vector<8x8xbf16> to vector<1x1x1x8x8xbf16>
    tpu.vector_store %arg8[%c0_45, %c0_46, %c2_47, %c0_48, %c0_49], %68 {strides = array<i32>} : memref<1x2x4x8x8xbf16, #tpu.memory_space<vmem>>, vector<1x1x1x8x8xbf16>,
    %69 = vector.extract_strided_slice %36 {offsets = [0, 80], sizes = [8, 8], strides = [1, 1]} : vector<8x96xbf16> to vector<8x8xbf16>
    %c0_50 = arith.constant 0 : index
    %c1_51 = arith.constant 1 : index
    %c2_52 = arith.constant 2 : index
    %c0_53 = arith.constant 0 : index
    %c0_54 = arith.constant 0 : index
    %70 = vector.load %arg8[%c0_50, %c1_51, %c2_52, %c0_53, %c0_54] : memref<1x2x4x8x8xbf16, #tpu.memory_space<vmem>>, vector<1x1x1x8x8xbf16>
    %71 = vector.shape_cast %70 : vector<1x1x1x8x8xbf16> to vector<8x8xbf16>
    %72 = vector.shape_cast %69 : vector<8x8xbf16> to vector<1x1x1x8x8xbf16>
    tpu.vector_store %arg8[%c0_50, %c1_51, %c2_52, %c0_53, %c0_54], %72 {strides = array<i32>} : memref<1x2x4x8x8xbf16, #tpu.memory_space<vmem>>, vector<1x1x1x8x8xbf16>,
    %73 = vector.extract_strided_slice %36 {offsets = [0, 24], sizes = [8, 8], strides = [1, 1]} : vector<8x96xbf16> to vector<8x8xbf16>
    %c0_55 = arith.constant 0 : index
    %c3 = arith.constant 3 : index
    %c0_56 = arith.constant 0 : index
    %c0_57 = arith.constant 0 : index
    %74 = vector.load %arg7[%c0_55, %c3, %c0_56, %c0_57] : memref<1x4x8x8xbf16, #tpu.memory_space<vmem>>, vector<1x1x8x8xbf16>
    %75 = vector.shape_cast %74 : vector<1x1x8x8xbf16> to vector<8x8xbf16>
    %76 = vector.shape_cast %73 : vector<8x8xbf16> to vector<1x1x8x8xbf16>
    tpu.vector_store %arg7[%c0_55, %c3, %c0_56, %c0_57], %76 {strides = array<i32>} : memref<1x4x8x8xbf16, #tpu.memory_space<vmem>>, vector<1x1x8x8xbf16>,
    %77 = vector.extract_strided_slice %36 {offsets = [0, 56], sizes = [8, 8], strides = [1, 1]} : vector<8x96xbf16> to vector<8x8xbf16>
    %c0_58 = arith.constant 0 : index
    %c0_59 = arith.constant 0 : index
    %c3_60 = arith.constant 3 : index
    %c0_61 = arith.constant 0 : index
    %c0_62 = arith.constant 0 : index
    %78 = vector.load %arg8[%c0_58, %c0_59, %c3_60, %c0_61, %c0_62] : memref<1x2x4x8x8xbf16, #tpu.memory_space<vmem>>, vector<1x1x1x8x8xbf16>
    %79 = vector.shape_cast %78 : vector<1x1x1x8x8xbf16> to vector<8x8xbf16>
    %80 = vector.shape_cast %77 : vector<8x8xbf16> to vector<1x1x1x8x8xbf16>
    tpu.vector_store %arg8[%c0_58, %c0_59, %c3_60, %c0_61, %c0_62], %80 {strides = array<i32>} : memref<1x2x4x8x8xbf16, #tpu.memory_space<vmem>>, vector<1x1x1x8x8xbf16>,
    %81 = vector.extract_strided_slice %36 {offsets = [0, 88], sizes = [8, 8], strides = [1, 1]} : vector<8x96xbf16> to vector<8x8xbf16>
    %c0_63 = arith.constant 0 : index
    %c1_64 = arith.constant 1 : index
    %c3_65 = arith.constant 3 : index
    %c0_66 = arith.constant 0 : index
    %c0_67 = arith.constant 0 : index
    %82 = vector.load %arg8[%c0_63, %c1_64, %c3_65, %c0_66, %c0_67] : memref<1x2x4x8x8xbf16, #tpu.memory_space<vmem>>, vector<1x1x1x8x8xbf16>
    %83 = vector.shape_cast %82 : vector<1x1x1x8x8xbf16> to vector<8x8xbf16>
    %84 = vector.shape_cast %81 : vector<8x8xbf16> to vector<1x1x1x8x8xbf16>
    tpu.vector_store %arg8[%c0_63, %c1_64, %c3_65, %c0_66, %c0_67], %84 {strides = array<i32>} : memref<1x2x4x8x8xbf16, #tpu.memory_space<vmem>>, vector<1x1x1x8x8xbf16>,
    return
  }
  func.func @transform_0(%arg0: i32, %arg1: i32) -> (i32, i32, i32) {
    %c0_i32 = arith.constant 0 : i32
    %c0_i32_0 = arith.constant 0 : i32
    return %arg0, %arg1, %c0_i32 : i32, i32, i32
  }
  func.func @transform_1(%arg0: i32, %arg1: i32) -> (i32, i32) {
    %c0_i32 = arith.constant 0 : i32
    %c0_i32_0 = arith.constant 0 : i32
    %c0_i32_1 = arith.constant 0 : i32
    return %c0_i32, %c0_i32_0 : i32, i32
  }
  func.func @transform_2(%arg0: i32, %arg1: i32) -> (i32, i32) {
    %c0_i32 = arith.constant 0 : i32
    %c0_i32_0 = arith.constant 0 : i32
    %c0_i32_1 = arith.constant 0 : i32
    return %c0_i32, %c0_i32_0 : i32, i32
  }
  func.func @transform_3(%arg0: i32, %arg1: i32) -> (i32, i32) {
    %c0_i32 = arith.constant 0 : i32
    %c0_i32_0 = arith.constant 0 : i32
    %c0_i32_1 = arith.constant 0 : i32
    return %c0_i32, %c0_i32_0 : i32, i32
  }
  func.func @transform_4(%arg0: i32, %arg1: i32) -> (i32, i32) {
    %c0_i32 = arith.constant 0 : i32
    %c0_i32_0 = arith.constant 0 : i32
    %c0_i32_1 = arith.constant 0 : i32
    return %c0_i32, %c0_i32_0 : i32, i32
  }
  func.func @transform_5(%arg0: i32, %arg1: i32) -> (i32, i32, i32, i32) {
    %c0_i32 = arith.constant 0 : i32
    %c0_i32_0 = arith.constant 0 : i32
    %c0_i32_1 = arith.constant 0 : i32
    return %arg0, %c0_i32, %arg1, %c0_i32_0 : i32, i32, i32, i32
  }
  func.func @transform_6(%arg0: i32, %arg1: i32) -> (i32, i32, i32, i32, i32) {
    %c0_i32 = arith.constant 0 : i32
    %c0_i32_0 = arith.constant 0 : i32
    %c0_i32_1 = arith.constant 0 : i32
    %c0_i32_2 = arith.constant 0 : i32
    return %arg0, %c0_i32, %c0_i32_0, %arg1, %c0_i32_1 : i32, i32, i32, i32, i32
  }
}

</mosaic_0001>

<bundles_post_ra>
// kernel: tpu_custom_call.1
= control target key start
LH: loop header
LB: loop body
LE: loop exit
PB: predicated region body
PF: predicated region fallthrough
CT: control target
= control target key end

     0   :  { %s1274_s0 = inlined_call_operand.hbm [shape: f32[2,8,32], index: 0, kind: input, shape index: {}]   ;;  %s1275_s1 = inlined_call_operand.vmem [shape: f32[1,32], index: 1, kind: input, shape index: {}]   ;;  %s1276_s2 = inlined_call_operand.vmem [shape: f32[1,32], index: 2, kind: input, shape index: {}]   ;;  %s1277_s3 = inlined_call_operand.hbm [shape: bf16[32,96], index: 3, kind: input, shape index: {}]   ;;  %s1278_s4 = inlined_call_operand.vmem [shape: f32[1,96], index: 4, kind: input, shape index: {}]   ;;  %s1279_s5 = inlined_call_operand.hbm [shape: bf16[2,4,8,8], index: 5, kind: output, shape index: {0}]   ;;  %s1280_s6 = inlined_call_operand.hbm [shape: bf16[2,2,4,8,8], index: 6, kind: output, shape index: {1}]  }
   0x1   :  { %1284 = sst [smem:[#allocation16_spill]] %s1277_s3 }
   0x2   :  { %12 = vsyncpa [#allocation3], 0 }
   0x3   :  { %14 = vsyncpa [#allocation3 + $0x1], 0 }
   0x4   :  { %15 = vsyncpa [#allocation6], 0 }
   0x5   :  { %16 = vsyncpa [#allocation4], 0 }
   0x6   :  { %18 = vsyncpa [#allocation4 + $0x1], 0 }
   0x7   :  { %19 = vsyncpa [#allocation9], 0 }
   0x8   :  { %21 = vsyncpa [#allocation9 + $0x1], 0  ;;  %s1011_s21 = smov 0   ;;  %s1013_s22 = smov 0  }
   0x9   :  { %s1015_s23 = smov 0   ;;  %s1017_s24 = smov 0  }
   0xa   :  { %s1019_s25 = smov 0   ;;  %s1021_s26 = smov 0  }
   0xb LB: > { %1285 = sst [smem:[#allocation14_spill]] %s950_s25  ;;  %s637_s27 = sadd.s32 4294967295, %s954_s26   ;;  %s954_s26 = sphi %s1021_s26, %s27_s26   ;;  %s950_s25 = sphi %s1019_s25, %s1301_s25   ;;  %s946_s24 = sphi %s1017_s24, %s1300_s24   ;;  %s942_s23 = sphi %s1015_s23, %s1304_s23   ;;  %s938_s22 = sphi %s1013_s22, %s1303_s22   ;;  %s934_s21 = sphi %s1011_s21, %s1302_s21  }
   0xc   : > { %s638_s28 = sadd.s32 4294967294, %s954_s26   ;;  %p61_p0 = scmp.ne.s32.totalorder %s938_s22, %s934_s21 }
   0xd   : > { %p1045_p1 = scmp.eq.s32.totalorder %s637_s27, 0  ;;  %p1049_p2 = scmp.eq.s32.totalorder %s637_s27, 1 }
   0xe   : > { %p177_p3 = scmp.eq.s32.totalorder %s638_s28, 1  ;;  %p639_p5 = scmp.ge.s32.totalorder %s954_s26, 1 }
   0xf   : > { %p1055_p4 = por %p1045_p1, %p61_p0  ;;  %p212_p7 = scmp.lt.s32.totalorder %s954_s26, 3 }
  0x10   : > { %p1060_p6 = por %p177_p3, %p61_p0  ;;  %s956_s10 = smov [#allocation5]  }
  0x11   : > { %s1288_s7 = scalar_select %p1055_p4, 1, 0 }
  0x12   : > { %s1289_s8 = scalar_select %p1060_p6, 1, 0 }
  0x13   : > { %p1065_p8 = pnand %p639_p5, %p212_p7  ;;  %s230_s11 = sshll.u32 %s956_s10, 4  ;;  %s231_s11 = int_to_ptr.vmem [resolvable:$true] %s230_s11 }
  0x14   : > { %s39_s13 = sadd.s32 1, %s950_s25  ;;  %s797_s14 = scalar_lea.vmem %s231_s11, 256 }
  0x15   : > { %p698_p9 = pneg %p1065_p8  ;;  %p798_p13 = scmp.ne.s32.totalorder %s231_s11, %s797_s14 }
  0x16   : > { %p805_p5 = scmp.lt.s32.totalorder %s231_s11, %s231_s11  ;;  %p806_p7 = scmp.lt.s32.totalorder %s797_s14, %s797_s14 }
  0x17   : > { %p1074_p11 = pnand %p698_p9, %p1045_p1 }
  0x18   : > { %p807_p6 = por %p806_p7, %p805_p5 }
  0x19   : > { %p788_p12 = pneg %p1074_p11 }
  0x1b   : > { %p800_p0 = pnand %p798_p13, %p788_p12 }
  0x1d   : > { %p801_p3 = pneg %p800_p0 }
  0x1f   : > { %p808_p4 = pnand %p807_p6, %p801_p3 }
  0x21   : > { %811 = shalt.err (!%p808_p4)
}
  0x22   : > { %s957_s15 = smov 64   ;;  %s958_s16 = smov 4  }
  0x23   : > { %s1292_s3 = sld [smem:[#allocation16_spill]]  ;;  %p41_p6 = scmp.ge.s32.totalorder %s39_s13, 2 }
  0x24   : > { %s48_s19 = sadd.s32 1, %s942_s23  ;;  %p55_p4 = scmp.ne.s32.totalorder %s942_s23, %s938_s22 }
  0x25   : > { %p56_p9 = scmp.eq.s32.totalorder %s954_s26, 0  ;;  %s1306_s13 = smov (%p41_p6, %s39_s13), 0 }
  0x26   : > { %1293 = sst [smem:[#allocation15_spill]] %s1306_s13  ;;  %p1098_p13 = por %p1049_p2, %p55_p4 }
  0x27   : > { %p1092_p12 = por %p56_p9, %p55_p4  ;;  %s43_s28 = ssub.s32 %s950_s25, %s1306_s13 }
  0x28   : > { %p714_p0 = scmp.lt.s32.totalorder %s954_s26, 2  ;;  %s247_s10 = sand.u32 1, %s942_s23  }
  0x29   : > { %701 = dma.hbm_to_vmem [thread:$0]  (!%p1074_p11), %s1292_s3, 256, %s231_s11, [#allocation6], %s957_s15, %s957_s15, %s958_s16  }
  0x2a   : > { %p46_p11 = scmp.eq.s32.totalorder %s43_s28, 0  ;;  %s642_s11 = sshll.u32 %s247_s10, 3 }
  0x2b   : > { %s643_s14 = sshll.u32 %s950_s25, 7  ;;  %s251_s18 = scalar_lea.vmem [#allocation2], %s642_s11 }
  0x2c   : > { %s1107_s12 = scalar_select %p46_p11, %s942_s23, %s48_s19  }
  0x2d   : > { %s257_s17 = scalar_lea.hbm %s1274_s0, %s643_s14  ;;  %s259_s3 = sshll.u32 %s251_s18, 4  ;;  %s260_s3 = int_to_ptr.vmem [resolvable:$true] %s259_s3 }
  0x2e   : > { %p1115_p2 = pnand %p714_p0, %p1092_p12  ;;  %s248_s13 = scalar_lea.sflag [#allocation3], %s247_s10 }
  0x2f   : > { %s825_s28 = scalar_lea.vmem %s260_s3, 128  ;;  %s959_s19 = smov [#allocation2]  }
  0x30   : > { %p814_p3 = pneg %p1115_p2  ;;  %p826_p5 = scmp.ne.s32.totalorder %s260_s3, %s825_s28 }
  0x31   : > { %s830_s25 = sshll.u32 %s959_s19, 4  ;;  %s831_s25 = int_to_ptr.vmem [resolvable:$false] %s830_s25 }
  0x32   : > { %p828_p7 = pnand %p826_p5, %p814_p3  ;;  %s832_s14 = scalar_lea.vmem %s831_s25, 256 }
  0x33   : > { %p833_p4 = scmp.lt.s32.totalorder %s260_s3, %s831_s25  ;;  %p834_p9 = scmp.lt.s32.totalorder %s832_s14, %s825_s28 }
  0x34   : > { %p829_p6 = pneg %p828_p7 }
  0x35   : > { %p835_p11 = por %p834_p9, %p833_p4 }
  0x37   : > { %p836_p10 = pnand %p835_p11, %p829_p6 }
  0x39   : > { %839 = shalt.err (!%p836_p10)
}
  0x3a   : > { %705 = dma.hbm_to_vmem [thread:$0]  (!%p1115_p2), %s257_s17, 128, %s260_s3, %s248_s13  }
  0x3b   : > { %268 = sbr.rel (%p1065_p8) target bundleno = 754 (0x2f2), region = 40  ;;  %s1126_s20 = sand.u32 (!%p1065_p8), 1, %s938_s22  }
  0x3c   : > { %s645_s10 = sshll.u32 (!%p1065_p8), %s1126_s20, 3  ;;  %s271_s11 = scalar_lea.sflag (!%p1065_p8), [#allocation3], %s1126_s20 }
  0x3d   : > { %s274_s15 = scalar_lea.vmem (!%p1065_p8), [#allocation2], %s645_s10  ;;  %p1297_p12 = scmp.ne.s32.totalorder (!%p1065_p8), %s1288_s7, 0 }
  0x40   : > { %917 = dma.done.wait (%p1297_p12), %s271_s11, 128  }
  0x41   : > { %919 = vsyncadd (%p1297_p12), %s271_s11, 4294967168 }
  0x42   : > { %921 = dma.done.wait (%p1045_p1), [#allocation6], 256  }
  0x43   : > { %923 = vsyncadd (%p1045_p1), [#allocation6], 4294967040  ;;  %vm314_vm0 = vcmask 261120   ;;  %v313_v0 = vld [vmem:[%s274_s15] sm:$0xff]  ;;  %v782_v7 = vld [vmem:[#allocation5 + $0x8] sm:$0xff]   ;;  %v960_v8 = vmov 0.0  }
  0x44   : > { %v315_v1 = vsel %vm314_vm0, %v313_v0, 0.0  ;;  %680 = vmatprep.subr.bf16.mxu0 %v960_v8  ;;  %vm961_vm1 = vmmov 0   ;;  %v783_v9 = vld [vmem:[#allocation5] sm:$0xff]   ;;  %v649_v14 = vld [vmem:[%s1275_s1] ss:$0 sm:$0xff]  ;;  %s647_s16 = sshll.u32 %s1126_s20, 4 }
  0x45   : > { %316 = vadd.xlane.f32.xlu0 %v315_v1  ;;  %684 = vmatprep.mubr.msk.bf16.mxu0 %vm961_vm1, %v960_v8  ;;  %v650_v16 = vld [vmem:[%s1276_s2] ss:$0 sm:$0xff]  ;;  %vm413_vm2 = vcmask 60416   ;;  %s962_s17 = smov 120   ;;  %s963_s18 = smov 96  }
  0x46   : > { %681 = vmatpush3.bf16.msra.mxu0 %v782_v7  ;;  %v651_v20 = vld [vmem:[%s1278_s4] ss:$0 sm:$0xff]  ;;  %s1151_s30 = scalar_lea.vmem [#allocation7], %s647_s16  ;;  %s964_s28 = smov 72  }
  0x47   : > { %682 = vmatprep.subr.bf16.mxu0 %v960_v8  ;;  %s965_s19 = smov 64   ;;  %s966_s14 = smov 88  }
  0x48   : > { %s967_s10 = smov 56   ;;  %s968_s11 = smov 112  }
  0x49   : > { %s969_s15 = smov 80   ;;  %s970_s3 = smov 48  }
  0x4a   : > { %683 = vmatpush3.bf16.msra.mxu0 %v783_v9  ;;  %s971_s25 = smov 104   ;;  %s972_s29 = smov 40  }
  0x4b   : > { %s648_s7 = sshll.u32 %s1126_s20, 5  ;;  %s492_s13 = sshll.u32 %s1151_s30, 4  ;;  %s1177_s13 = int_to_ptr.vmem [resolvable:$true] %s492_s13 }
  0x4c   : > { %s1159_s9 = scalar_lea.vmem [#allocation8], %s648_s7  ;;  %s675_s16 = sshll.u32 %s946_s24, 8 }
  0xce   : > { %v317_v2 = vpop.xlane.xlu0 %316 }
  0xcf   : > { %v319_v3 = vmul.f32 0.03125, %v317_v2 }
  0xd1   : > { %v320_v4 = vsub.f32 %v313_v0, %v319_v3 }
  0xd3   : > { %v321_v5 = vmul.f32 %v320_v4, %v320_v4 }
  0xd5   : > { %v322_v6 = vsel %vm314_vm0, %v321_v5, 0.0 }
  0xd6   : > { %323 = vadd.xlane.f32.xlu0 %v322_v6 }
 0x15f   : > { %v324_v10 = vpop.xlane.xlu0 %323 }
 0x160   : > { %v325_v11 = vmul.f32 0.03125, %v324_v10 }
 0x162   : > { %v326_v12 = vadd.f32 1e-05, %v325_v11 }
 0x164   : > { %784 = vrsqrt.f32 %v326_v12 }
 0x171   : > { %v785_v13 = vpop.eup %784 }
 0x172   : > { %v328_v15 = vmul.f32 %v785_v13, %v320_v4 }
 0x174   : > { %v336_v17 = vmul.f32 %v649_v14, %v328_v15 }
 0x176   : > { %v344_v18 = vadd.f32 %v650_v16, %v336_v17 }
 0x178   : > { %v345_v19 = vpack.c.bf16 %v344_v18, %v344_v18 }
 0x17a   : > { %685 = vmatmul.mubr.msk.bf16.vlgmr.msra.gmra.mxu0 %vm314_vm0, %v345_v19 }
 0x23a   : > { %v406_v21 = vpop.f32.mrf.mxu0 }
 0x23b   : > { %v407_v22 = vadd.f32 %v651_v20, %v406_v21 }
 0x23c   : > { %v686_v23 = vpop.f32.mrf.mxu0 }
 0x23d   : > { %v412_v24 = vpack.c.bf16 %v407_v22, %v407_v22 }
 0x23e   : > { %v409_v25 = vpop.f32.mrf.mxu0 }
 0x23f   : > { %427 = vrot.lane.b32.xlu0 %v412_v24, %s962_s17  ;;  %418 = vrot.lane.b32.xlu1 %v412_v24, %s963_s18  ;;  %414 = vst.msk [vmem:[%s1151_s30] sm:$0xf] %vm413_vm2, %v412_v24  ;;  %s509_s17 = sshll.u32 %s1159_s9, 4  ;;  %s1188_s17 = int_to_ptr.vmem [resolvable:$true] %s509_s17 }
 0x240   : > { %v687_v26 = vpop.f32.mrf.mxu0 }
 0x243   : > { %462 = vrot.lane.b32.xlu0 %v412_v24, %s964_s28  ;;  %422 = vrot.lane.b32.xlu1 %v412_v24, %s965_s19 }
 0x247   : > { %432 = vrot.lane.b32.xlu1 %v412_v24, %s966_s14  ;;  %s1185_s14 = scalar_lea.hbm %s1279_s5, %s675_s16 }
 0x24b   : > { %437 = vrot.lane.b32.xlu1 %v412_v24, %s967_s10  ;;  %s676_s10 = sshll.u32 %s946_s24, 9 }
 0x24f   : > { %442 = vrot.lane.b32.xlu1 %v412_v24, %s968_s11  ;;  %s473_s11 = scalar_lea.sflag [#allocation4], %s1126_s20 }
 0x253   : > { %447 = vrot.lane.b32.xlu1 %v412_v24, %s969_s15  ;;  %s840_s15 = scalar_lea.vmem %s1177_s13, 256 }
 0x254   : > { %p841_p1 = scmp.ne.s32.totalorder %s1177_s13, %s840_s15 }
 0x256   : > { %p842_p8 = pnand %p841_p1, %p1098_p13 }
 0x257   : > { %452 = vrot.lane.b32.xlu1 %v412_v24, %s970_s3  ;;  %s973_s3 = smov [#allocation7]  }
 0x258   : > { %p843_p10 = pneg %p842_p8 }
 0x25b   : > { %457 = vrot.lane.b32.xlu1 %v412_v24, %s971_s25  ;;  %s844_s25 = sshll.u32 %s973_s3, 4  ;;  %s845_s25 = int_to_ptr.vmem [resolvable:$false] %s844_s25 }
 0x25c   : > { %p847_p0 = scmp.lt.s32.totalorder %s1177_s13, %s845_s25 }
 0x25f   : > { %467 = vrot.lane.b32.xlu1 %v412_v24, %s972_s29  ;;  %s846_s29 = scalar_lea.vmem %s845_s25, 512 }
 0x260   : > { %p848_p2 = scmp.lt.s32.totalorder %s846_s29, %s840_s15 }
 0x262   : > { %p849_p3 = por %p848_p2, %p847_p0 }
 0x264   : > { %p850_p5 = pnand %p849_p3, %p843_p10 }
 0x2b1   : > { %v428_v27 = vpop.permute.xlu0 %427  ;;  %v419_v28 = vpop.permute.xlu1 %418 }
 0x2b2   : > { %657 = vst.msk [vmem:[%s1151_s30 + $0x4] sm:$0xf] %vm413_vm2, %v428_v27  ;;  %421 = vst.msk [vmem:[%s1159_s9] sm:$0xf] %vm413_vm2, %v419_v28 }
 0x2b5   : > { %v463_v29 = vpop.permute.xlu0 %462  ;;  %v423_v30 = vpop.permute.xlu1 %422 }
 0x2b6   : > { %664 = vst.msk [vmem:[%s1159_s9 + $0xc] sm:$0xf] %vm413_vm2, %v463_v29  ;;  %656 = vst.msk [vmem:[%s1159_s9 + $0x10] sm:$0xf] %vm413_vm2, %v423_v30 }
 0x2b9   : > { %v433_v31 = vpop.permute.xlu1 %432 }
 0x2ba   : > { %658 = vst.msk [vmem:[%s1159_s9 + $0x4] sm:$0xf] %vm413_vm2, %v433_v31 }
 0x2bd   : > { %v438_v32 = vpop.permute.xlu1 %437 }
 0x2be   : > { %659 = vst.msk [vmem:[%s1159_s9 + $0x14] sm:$0xf] %vm413_vm2, %v438_v32 }
 0x2c1   : > { %v443_v33 = vpop.permute.xlu1 %442 }
 0x2c2   : > { %660 = vst.msk [vmem:[%s1151_s30 + $0x8] sm:$0xf] %vm413_vm2, %v443_v33 }
 0x2c5   : > { %v448_v34 = vpop.permute.xlu1 %447 }
 0x2c6   : > { %661 = vst.msk [vmem:[%s1159_s9 + $0x8] sm:$0xf] %vm413_vm2, %v448_v34 }
 0x2c9   : > { %v453_v35 = vpop.permute.xlu1 %452 }
 0x2ca   : > { %662 = vst.msk [vmem:[%s1159_s9 + $0x18] sm:$0xf] %vm413_vm2, %v453_v35 }
 0x2cd   : > { %v458_v36 = vpop.permute.xlu1 %457 }
 0x2ce   : > { %663 = vst.msk [vmem:[%s1151_s30 + $0xc] sm:$0xf] %vm413_vm2, %v458_v36 }
 0x2cf   : > { %853 = shalt.err (!%p850_p5)
}
 0x2d0   : > { %s854_s30 = scalar_lea.hbm %s1185_s14, 256  ;;  %s858_s18 = scalar_lea.hbm %s1279_s5, 512 }
 0x2d1   : > { %p855_p7 = scmp.ne.s32.totalorder %s1185_s14, %s854_s30  ;;  %p859_p9 = scmp.lt.s32.totalorder %s1185_s14, %s1279_s5 }
 0x2d2   : > { %p860_p11 = scmp.lt.s32.totalorder %s858_s18, %s854_s30 }
 0x2d3   : > { %p856_p6 = pnand %p855_p7, %p1098_p13 }
 0x2d4   : > { %p861_p12 = por %p860_p11, %p859_p9 }
 0x2d5   : > { %p857_p4 = pneg %p856_p6 }
 0x2d7   : > { %p862_p1 = pnand %p861_p12, %p857_p4 }
 0x2d9   : > { %865 = shalt.err (!%p862_p1)
}
 0x2da   : > { %s974_s15 = smov 4   ;;  %s1223_s30 = scalar_lea.hbm %s1280_s6, %s676_s10  ;;  %v468_v37 = vpop.permute.xlu1 %467 }
 0x2db   : > { %694 = dma.vmem_to_hbm [thread:$0]  (%p1098_p13), %s1177_s13, 256, %s1185_s14, %s473_s11, %s965_s19, %s965_s19, %s974_s15  }
 0x2dc   : > { %665 = vst.msk [vmem:[%s1159_s9 + $0x1c] sm:$0xf] %vm413_vm2, %v468_v37  ;;  %s478_s7 = scalar_lea.sflag [#allocation9], %s1126_s20  ;;  %s866_s16 = scalar_lea.vmem %s1188_s17, 512 }
 0x2dd   : > { %p867_p8 = scmp.ne.s32.totalorder %s1188_s17, %s866_s16  ;;  %s975_s18 = smov [#allocation8]  }
 0x2de   : > { %s870_s28 = sshll.u32 %s975_s18, 4  ;;  %s871_s28 = int_to_ptr.vmem [resolvable:$false] %s870_s28 }
 0x2df   : > { %p868_p10 = pnand %p867_p8, %p1098_p13  ;;  %s872_s3 = scalar_lea.vmem %s871_s28, 1024 }
 0x2e0   : > { %p873_p2 = scmp.lt.s32.totalorder %s1188_s17, %s871_s28  ;;  %p874_p3 = scmp.lt.s32.totalorder %s872_s3, %s866_s16 }
 0x2e1   : > { %p869_p0 = pneg %p868_p10 }
 0x2e2   : > { %p875_p5 = por %p874_p3, %p873_p2 }
 0x2e4   : > { %p876_p7 = pnand %p875_p5, %p869_p0 }
 0x2e6   : > { %879 = shalt.err (!%p876_p7)
}
 0x2e7   : > { %s880_s24 = scalar_lea.hbm %s1223_s30, 512  ;;  %s884_s13 = scalar_lea.hbm %s1280_s6, 1024 }
 0x2e8   : > { %p881_p6 = scmp.ne.s32.totalorder %s1223_s30, %s880_s24  ;;  %p885_p11 = scmp.lt.s32.totalorder %s1223_s30, %s1280_s6 }
 0x2e9   : > { %p886_p12 = scmp.lt.s32.totalorder %s884_s13, %s880_s24 }
 0x2ea   : > { %p882_p4 = pnand %p881_p6, %p1098_p13 }
 0x2eb   : > { %p887_p1 = por %p886_p12, %p885_p11 }
 0x2ec   : > { %p883_p9 = pneg %p882_p4 }
 0x2ee   : > { %p888_p8 = pnand %p887_p1, %p883_p9 }
 0x2f0   : > { %891 = shalt.err (!%p888_p8)
}
 0x2f1   : > { %695 = dma.vmem_to_hbm [thread:$0]  (%p1098_p13), %s1188_s17, 512, %s1223_s30, %s478_s7, %s965_s19, %s965_s19, %s974_s15  }
 0x2f2 PF: > { %s524_s11 = sand.u32 1, %s934_s21   ;;  %p1298_p10 = scmp.ne.s32.totalorder %s1289_s8, 0 }
 0x2f3   : > { %p1299_p0 = scmp.ge.s32.totalorder %s954_s26, 2  ;;  %s525_s25 = scalar_lea.sflag [#allocation4], %s524_s11 }
 0x2f5   : > { %p707_p2 = pnand %p1299_p0, %p1298_p10 }
 0x2f7   : > { %p708_p3 = pneg %p707_p2 }
 0x2f9   : > { %925 = dma.done.wait (%p708_p3), %s525_s25, 256  }
 0x2fa   : > { %927 = vsyncadd (%p708_p3), %s525_s25, 4294967040  ;;  %s534_s29 = scalar_lea.sflag [#allocation9], %s524_s11 }
 0x2fb   : > { %929 = dma.done.wait (%p708_p3), %s534_s29, 512  }
 0x2fc   : > { %931 = vsyncadd (%p708_p3), %s534_s29, 4294966784  ;;  %s27_s26 = sadd.s32 1, %s954_s26   ;;  %s1300_s24 = sld [smem:[#allocation14_spill]] }
 0x2fd   : > { %p24_p5 = scmp.ge.s32.totalorder %s27_s26, 4   ;;  %s1301_s25 = sld [smem:[#allocation15_spill]] }
 0x2fe   : > { %s1302_s21 = smov %s938_s22  ;;  %s1303_s22 = smov %s942_s23 }
 0x2ff   : > { %s1304_s23 = smov %s1107_s12  ;;  %26 = sbr.rel (!%p24_p5) target bundleno = 11 (0xb), region = 116 }
 0x304   :  { %539 = vsyncpa [#allocation3], 1 }
 0x305   :  { %541 = vsyncpa [#allocation3 + $0x1], 1 }
 0x306   :  { %542 = vsyncpa [#allocation6], 1 }
 0x307   :  { %543 = vsyncpa [#allocation4], 1 }
 0x308   :  { %545 = vsyncpa [#allocation4 + $0x1], 1 }
 0x309   :  { %546 = vsyncpa [#allocation9], 1 }
 0x30a   :  { %548 = vsyncpa [#allocation9 + $0x1], 1 }

</bundles_post_ra>
